<compile_context>
chip_gen: v7x
topology: tpu7x:2x2x1
jax: 0.10.0
libtpu: 0.0.40
codegen_flags: <defaults>
</compile_context>

<pallas_src>
import functools

import jax
import jax.numpy as jnp
from jax.experimental import pallas as pl
from jax.experimental.pallas import tpu as pltpu


def style_encoder_kernel(x_ref, wb_ref, o_ref):
    # x : (Bt, H)        batch tile of hyperparameters
    # wb: (H+1, E)       rows 0..H-1 = W^T, row H = bias (packed at init)
    # o : (Bt, E)
    H = wb_ref.shape[0] - 1
    x = x_ref[...].astype(jnp.float32)
    w = wb_ref[0:H, :].astype(jnp.float32)          # (H, E)
    b = wb_ref[H:H + 1, :].astype(jnp.float32)      # (1, E)

    # Single MXU push/pop (padded K=H contraction) + one VALU add.
    acc = jnp.dot(x, w, preferred_element_type=jnp.float32,
                  precision=jax.lax.Precision.HIGHEST) + b
    o_ref[...] = acc.astype(o_ref.dtype)


def make_style_encoder(weight, bias, *, batch_tile=512, min_batch_for_grid=512):
    """One-time init: pack W^T and bias into a single (H+1, E) operand.

    Returns `apply(hyperparameters)` whose hot path is a single pallas_call:
      * gridless single VMEM block for small B (the common TabPFN case), or
      * a 1-D "parallel" batch grid when B is large and tileable.
    """
    E, H = weight.shape
    wb = jnp.concatenate(
        [jnp.asarray(weight).T,                    # (H, E)
         jnp.asarray(bias).reshape(1, E)],         # (1, E)
        axis=0)                                    # (H+1, E) — built once

    @functools.partial(jax.jit)
    def apply(hyperparameters):
        B = hyperparameters.shape[0]
        out_dtype = hyperparameters.dtype
        cost = pl.CostEstimate(
            flops=2 * B * H * E + B * E,
            transcendentals=0,
            bytes_accessed=int(
                hyperparameters.size * hyperparameters.dtype.itemsize
                + wb.size * wb.dtype.itemsize
                + B * E * jnp.dtype(out_dtype).itemsize),
        )
        out_shape = jax.ShapeDtypeStruct((B, E), out_dtype)

        use_grid = (B >= min_batch_for_grid) and (B % batch_tile == 0)
        if not use_grid:
            # Gridless single block: one VMEM tile per operand, no pipeline
            # machinery — the whole problem is a couple of KiB.
            return pl.pallas_call(
                style_encoder_kernel,
                out_shape=out_shape,
                in_specs=[
                    pl.BlockSpec(memory_space=pltpu.MemorySpace.VMEM),  # x
                    pl.BlockSpec(memory_space=pltpu.MemorySpace.VMEM),  # [W^T; b]
                ],
                out_specs=pl.BlockSpec(memory_space=pltpu.MemorySpace.VMEM),
                cost_estimate=cost,
            )(hyperparameters, wb)

        # Large-B path: tile the batch axis; weights stay a resident block.
        # "parallel" lets v7x's two TensorCores split the grid.
        return pl.pallas_call(
            style_encoder_kernel,
            out_shape=out_shape,
            grid=(B // batch_tile,),
            in_specs=[
                pl.BlockSpec((batch_tile, H), lambda i: (i, 0)),
                pl.BlockSpec((H + 1, E), lambda i: (0, 0)),
            ],
            out_specs=pl.BlockSpec((batch_tile, E), lambda i: (i, 0)),
            compiler_params=pltpu.CompilerParams(
                dimension_semantics=("parallel",)),
            cost_estimate=cost,
        )(hyperparameters, wb)

    return apply


if __name__ == "__main__":
    # StyleEncoder(num_hyperparameters=4, em_size=32), batch of 8 style rows.
    num_hyperparameters = 4
    em_size = 32
    batch = 8

    key = jax.random.PRNGKey(0)
    k_x, k_w, k_b, k_big = jax.random.split(key, 4)

    # Deterministic init mimicking nn.Linear default: U(-1/sqrt(H), 1/sqrt(H)).
    bound = 1.0 / (num_hyperparameters ** 0.5)
    weight = jax.random.uniform(
        k_w, (em_size, num_hyperparameters), jnp.float32, -bound, bound)
    bias = jax.random.uniform(k_b, (em_size,), jnp.float32, -bound, bound)
    hyperparameters = jax.random.normal(
        k_x, (batch, num_hyperparameters), jnp.float32)

    style_encoder = make_style_encoder(weight, bias)    # init-time prep

    # Small-batch (gridless) path — the canonical StyleEncoder call.
    out = jax.block_until_ready(style_encoder(hyperparameters))
    ref = hyperparameters @ weight.T + bias
    assert out.shape == (batch, em_size)
    assert jnp.allclose(out, ref, atol=1e-5, rtol=1e-5)

    # Large-batch (tiled, "parallel") path — exercised to confirm it compiles
    # and matches; only relevant if the workload ever has many style rows.
    big_x = jax.random.normal(k_big, (1024, num_hyperparameters), jnp.float32)
    big_out = jax.block_until_ready(style_encoder(big_x))
    big_ref = big_x @ weight.T + bias
    assert big_out.shape == (1024, em_size)
    assert jnp.allclose(big_out, big_ref, atol=1e-5, rtol=1e-5)

    print("KERNEL_OK")
</pallas_src>

<mosaic_0001>
module attributes {stable_mosaic.version = 11 : i64} {
  func.func @style_encoder_kernel(%arg0: memref<8x4xf32, #tpu.memory_space<vmem>>, %arg1: memref<5x32xf32, #tpu.memory_space<vmem>>, %arg2: memref<8x32xf32, #tpu.memory_space<vmem>>) attributes {dimension_semantics = [], scalar_prefetch = 0 : i64, scratch_operands = 0 : i64, tpu.core_type = #tpu.core_type<tc>} {
    %c0 = arith.constant 0 : index
    %c0_0 = arith.constant 0 : index
    %0 = vector.load %arg0[%c0, %c0_0] : memref<8x4xf32, #tpu.memory_space<vmem>>, vector<8x4xf32>
    %c0_1 = arith.constant 0 : index
    %c0_2 = arith.constant 0 : index
    %1 = vector.load %arg1[%c0_1, %c0_2] : memref<5x32xf32, #tpu.memory_space<vmem>>, vector<4x32xf32>
    %c4 = arith.constant 4 : index
    %c0_3 = arith.constant 0 : index
    %2 = vector.load %arg1[%c4, %c0_3] : memref<5x32xf32, #tpu.memory_space<vmem>>, vector<1x32xf32>
    %cst = arith.constant dense<0.000000e+00> : vector<8x32xf32>
    %3 = tpu.matmul %0, %1, %cst {dimension_numbers = #tpu.dot_dimension_numbers<[1], [0], [0], [1], [0, 0, 1, 1], [], []>, precision = #tpu.contract_precision<fp32>} : vector<8x4xf32>, vector<4x32xf32>, vector<8x32xf32> -> vector<8x32xf32>
    %4 = vector.broadcast %2 : vector<1x32xf32> to vector<8x32xf32>
    %5 = arith.addf %3, %4 : vector<8x32xf32>
    %c0_4 = arith.constant 0 : index
    %c0_5 = arith.constant 0 : index
    %6 = vector.load %arg2[%c0_4, %c0_5] : memref<8x32xf32, #tpu.memory_space<vmem>>, vector<8x32xf32>
    tpu.vector_store %arg2[%c0_4, %c0_5], %5 {strides = array<i32>} : memref<8x32xf32, #tpu.memory_space<vmem>>, vector<8x32xf32>,
    return
  }
}

</mosaic_0001>

<bundles_post_ra>
// kernel: apply.1
= control target key start
LH: loop header
LB: loop body
LE: loop exit
PB: predicated region body
PF: predicated region fallthrough
CT: control target
= control target key end

     0   :  { %vm23_vm0 = vcmask 1043456   ;;  %v569_v2 = vmov 0.0   ;;  %vm570_vm1 = vmmov 0   ;;  %vm19_vm2 = vcmask 31744   ;;  %s614_s0 = inlined_call_operand.vmem [shape: f32[8,4], index: 0, kind: input, shape index: {}]   ;;  %s615_s1 = inlined_call_operand.vmem [shape: f32[5,32], index: 1, kind: input, shape index: {}]   ;;  %s616_s2 = inlined_call_operand.hbm [shape: f32[8,32], index: 2, kind: output, shape index: {}]  }
   0x1   :  { %v13_v0 = vld [vmem:[%s615_s1] sm:$0xf]  ;;  %517 = vmatprep.subr.mxu0 %v569_v2  ;;  %519 = vmatprep.mubr.msk.f32.mxu0 %vm570_vm1, %v569_v2 }
   0x2   :  { %v12_v1 = vld [vmem:[%s614_s0] sm:$0xff]  ;;  %v25_v3 = vsel %vm23_vm0, %v13_v0, 0 }
   0x3   :  { %7 = vsyncpa [#allocation3], 0  ;;  %v28_v4 = vand.u32 4294901760, %v25_v3  ;;  %v21_v5 = vsel %vm19_vm2, %v12_v1, 0  ;;  %502 = vmatprep.subr.mxu1 %v569_v2  ;;  %504 = vmatprep.mubr.msk.f32.mxu1 %vm570_vm1, %v569_v2  ;;  %v489_v17 = vld [vmem:[%s615_s1 + $0x4] ss:$0 sm:$0xff] }
   0x4   :  { %v93_v6 = vand.u32 4294901760, %v21_v5  ;;  %s571_s14 = smov [#allocation2]   ;;  %vm473_vm3 = vcmask 261120  }
   0x5   :  { %v105_v7 = vsub.f32 %v25_v3, %v28_v4  ;;  %518 = vmatpush3.msra.mxu0 %v28_v4  ;;  %503 = vmatpush3.msra.mxu1 %v28_v4  ;;  %s481_s15 = sshll.u32 %s571_s14, 4  ;;  %s482_s15 = int_to_ptr.vmem [resolvable:$true] %s481_s15 }
   0x6   :  { %v94_v8 = vsub.f32 %v21_v5, %v93_v6  ;;  %507 = vmatprep.subr.mxu1 %v569_v2  ;;  %522 = vmatprep.subr.mxu0 %v569_v2  ;;  %s545_s16 = scalar_lea.vmem %s482_s15, 128  ;;  %p550_p1 = scmp.lt.s32.totalorder %s482_s15, %s482_s15 }
   0x7   :  { %v106_v9 = vand.u32 4294901760, %v105_v7  ;;  %p546_p0 = scmp.ne.s32.totalorder %s482_s15, %s545_s16  ;;  %p551_p2 = scmp.lt.s32.totalorder %s545_s16, %s545_s16 }
   0x8   :  { %v95_v10 = vand.u32 4294901760, %v94_v8 }
   0x9   :  { %v107_v11 = vsub.f32 %v105_v7, %v106_v9  ;;  %p552_p3 = por %p551_p2, %p550_p1 }
   0xa   :  { %520 = vmatmul.mubr.f32.vlgmr.msra.gmra.mrb[0].mxu0 %v95_v10  ;;  %v96_v12 = vsub.f32 %v94_v8, %v95_v10 }
   0xb   :  { %v108_v13 = vand.u32 4294901760, %v107_v11  ;;  %523 = vmatpush3.msra.mxu0 %v106_v9  ;;  %524 = vmatprep.mubr.msk.f32.mxu0 %vm570_vm1, %v569_v2  ;;  %p553_p4 = pnand %p552_p3, %p546_p0 }
   0xc   :  { %v97_v14 = vand.u32 4294901760, %v96_v12  ;;  %527 = vmatprep.subr.mxu0 %v569_v2 }
   0xe   :  { %505 = vmatmul.mubr.f32.vlgmr.msra.gmra.mrb[0].mxu1 %v97_v14 }
   0xf   :  { %508 = vmatpush3.msra.mxu1 %v108_v13  ;;  %509 = vmatprep.mubr.msk.f32.mxu1 %vm570_vm1, %v569_v2 }
  0x10   :  { %512 = vmatprep.subr.mxu1 %v569_v2 }
  0x12   :  { %525 = vmatmul.mubr.f32.vlgmr.msra.gmra.mrb[0].mxu0 %v93_v6 }
  0x13   :  { %528 = vmatpush3.msra.mxu0 %v28_v4  ;;  %529 = vmatprep.mubr.msk.f32.mxu0 %vm570_vm1, %v569_v2 }
  0x16   :  { %510 = vmatmul.mubr.f32.vlgmr.msra.gmra.mrb[0].mxu1 %v93_v6 }
  0x17   :  { %513 = vmatpush3.msra.mxu1 %v105_v7  ;;  %514 = vmatprep.mubr.msk.f32.mxu1 %vm570_vm1, %v569_v2 }
  0x1a   :  { %530 = vmatmul.mubr.f32.vlgmr.msra.gmra.mrb[0].mxu0 %v93_v6 }
  0x1e   :  { %515 = vmatmul.mubr.f32.vlgmr.msra.gmra.mrb[0].mxu1 %v94_v8 }
  0xed   :  { %v469_v15 = vpop.f32.mrb[0].mxu0 }
  0xee   :  { %v531_v16 = vpop.f32.mrb[1].mxu0 }
  0xf1   :  { %v249_v18 = vpop.f32.mrb[0].mxu1 }
  0xf2   :  { %v532_v19 = vadd.f32 %v489_v17, %v249_v18  ;;  %v516_v20 = vpop.f32.mrb[1].mxu1 }
  0xf4   :  { %v533_v21 = vadd.f32 %v532_v19, %v469_v15 }
  0xf6   :  { %474 = vst.msk [vmem:[#allocation2] sm:$0xff] %vm473_vm3, %v533_v21 }
  0xf7   :  { %556 = shalt.err (!%p553_p4)
}
  0xf8   :  { %s557_s1 = scalar_lea.hbm %s616_s2, 128 }
  0xf9   :  { %p558_p5 = scmp.ne.s32.totalorder %s616_s2, %s557_s1  ;;  %p561_p6 = scmp.lt.u32.totalorder %s557_s1, %s616_s2 }
  0xfb   :  { %p563_p7 = pnand %p561_p6, %p558_p5 }
  0xfd   :  { %566 = shalt.err (!%p563_p7)
}
  0xfe   :  { %484 = dma.vmem_to_hbm [thread:$0]  %s482_s15, 128, %s616_s2, [#allocation3]  }
  0xff   :  { %567 = dma.done.wait [#allocation3], 128  }
 0x100   :  { %568 = vsyncadd [#allocation3], 4294967168 }
 0x101   :  { %488 = vsyncpa [#allocation3], 1 }

</bundles_post_ra>
